<compile_context>
chip_gen: v6e
topology: v6e:2x2x1
jax: 0.10.0
libtpu: 0.0.40
codegen_flags: <defaults>
</compile_context>

<pallas_src>
import functools

import jax
import jax.numpy as jnp
from jax.experimental import pallas as pl
from jax.experimental.pallas import tpu as pltpu

LN_EPS = 1e-5          # PyTorch nn.LayerNorm default
FASTTEXT_DIM = 300


def _round_up(x, m):
    return ((x + m - 1) // m) * m


def _choose_tm(n, hidden_size, out_bytes):
    """Row-tile size: VMEM-budgeted, multiple of 16, prefers to divide n, grid >= 2."""
    n16 = _round_up(max(n, 1), 16)
    # Double-buffered pipeline footprint (bytes). Weights / fused params are grid-invariant
    # but conservatively counted double-buffered here.
    weight_bytes = 2 * (FASTTEXT_DIM * hidden_size * 2 + 8 * hidden_size * 4)
    per_row = 2 * (FASTTEXT_DIM * 4 + 4 + hidden_size * out_bytes)
    budget = 12 << 20      # fits v5e's ~16 MiB default scoped VMEM with headroom; safe on v7x
    avail = max(budget - weight_bytes, 0)
    tm_cap = max(16, min(2048, (avail // per_row) // 16 * 16))
    if n16 <= 16:
        return 16
    # Keep >= 2 grid steps so v7x's two TensorCores both get work.
    tm = min(tm_cap, _round_up(pl.cdiv(n16, 2), 16))
    # Prefer a tile that divides the (16-rounded) row count: no padded rows and, when n is
    # itself a multiple of 16, no post-kernel slice pass over the output.
    for cand in range(tm, 15, -16):
        if n16 % cand == 0:
            return cand
    return tm


def savo_kernel(stats_ref,      # SMEM (3,) f32: var_w, cov_wb, var_b of the score-path Linear
                emb_ref,        # (TM, 300) f32 fasttext embeddings
                sim_ref,        # (TM, 1)   f32 similarity scores
                wv_ref,         # (300, H)  bf16 W_voc (VMEM-resident)
                pvec_ref,       # (8, H)    f32 fused param vectors
                out_ref):       # (TM, H)   out dtype
    score = sim_ref[...]                              # (TM, 1) f32 — stays f32
    emb = emb_ref[...].astype(jnp.bfloat16)           # cast right before the MXU

    pv = pvec_ref[...]
    b_voc = pv[0:1, :]          # Linear_voc bias
    g_voc = pv[1:2, :]          # LayerNorm_voc gamma
    beta = pv[2:3, :]           # beta_voc + beta_score (pre-added on host)
    wgs = pv[3:4, :]            # g_score * (W_score - mean(W_score))
    bgs = pv[4:5, :]            # g_score * (b_score - mean(b_score))

    # --- voc path: bf16 MXU matmul (f32 accumulation) + f32 LayerNorm -------------------
    xv = jnp.dot(emb, wv_ref[...], preferred_element_type=jnp.float32) + b_voc
    # One-pass stats: independent cross-lane reductions (E[x], E[x^2]).
    mu = jnp.mean(xv, axis=-1, keepdims=True)
    ex2 = jnp.mean(xv * xv, axis=-1, keepdims=True)
    var = ex2 - mu * mu
    embed_voc = (xv - mu) * jax.lax.rsqrt(var + LN_EPS) * g_voc

    # --- score path: algebraic LayerNorm, no cross-lane reductions ----------------------
    # LN(s*w + b) = (s*(w-mw) + (b-mb)) * rsqrt(s^2*var_w + 2*s*cov_wb + var_b + eps)
    var_w = stats_ref[0]
    cov_wb = stats_ref[1]
    var_b = stats_ref[2]
    inv = jax.lax.rsqrt(score * score * var_w + 2.0 * score * cov_wb + var_b + LN_EPS)
    embed_score = (score * wgs + bgs) * inv

    # Padded rows (if any) see emb=0, score=0: a constant vector through LN -> finite
    # garbage that the wrapper slices off.  Never read rows >= n downstream.
    out_ref[...] = (embed_voc + embed_score + beta).astype(out_ref.dtype)


@functools.partial(jax.jit, static_argnames=("hidden_size", "out_dtype"))
def savo_forward(fasttext_emb, similarities, params, hidden_size, out_dtype=jnp.float32):
    """fasttext_emb: (BS, top_k, 300) f32; similarities: (BS, top_k) f32."""
    bs, top_k, fdim = fasttext_emb.shape
    n = bs * top_k
    out_bytes = jnp.dtype(out_dtype).itemsize

    tm = _choose_tm(n, hidden_size, out_bytes)
    n_pad = _round_up(n, tm)
    grid = (n_pad // tm,)

    # Pure reshapes (no data movement); pad rows only if tm does not divide n.
    emb2d = fasttext_emb.reshape(n, fdim)
    sim2d = similarities.reshape(n, 1).astype(jnp.float32)
    if n_pad != n:
        emb2d = jnp.pad(emb2d, ((0, n_pad - n), (0, 0)))
        sim2d = jnp.pad(sim2d, ((0, n_pad - n), (0, 0)))

    # VMEM-resident weights as bf16 (halves resident footprint + one-time DMA).
    wv = params["W_voc"].astype(jnp.bfloat16)                                  # (300, H)

    # Score-path LayerNorm precompute (exact algebra, f32) + fused (8, H) param vectors.
    w_s, b_s, g_s = params["W_score"], params["b_score"], params["g_score"]    # (1, H)
    wc = w_s - jnp.mean(w_s, axis=-1, keepdims=True)
    bc = b_s - jnp.mean(b_s, axis=-1, keepdims=True)
    stats = jnp.concatenate([jnp.mean(wc * wc).reshape(1),
                             jnp.mean(wc * bc).reshape(1),
                             jnp.mean(bc * bc).reshape(1)]).astype(jnp.float32)  # (3,)
    pvec = jnp.concatenate([
        params["b_voc"],
        params["g_voc"],
        params["beta_voc"] + params["beta_score"],
        wc * g_s,
        bc * g_s,
        jnp.zeros((3, hidden_size), jnp.float32),
    ], axis=0).astype(jnp.float32)                                             # (8, H)

    cost = pl.CostEstimate(
        flops=2 * n_pad * fdim * hidden_size,
        transcendentals=2 * n_pad,                      # two rsqrt per row
        bytes_accessed=(n_pad * fdim * 4                # f32 embeddings in
                        + n_pad * 4                     # f32 scores in
                        + n_pad * hidden_size * out_bytes   # output
                        + fdim * hidden_size * 2        # bf16 W_voc
                        + 8 * hidden_size * 4 + 12),    # fused vectors + stats
    )

    out2d = pl.pallas_call(
        savo_kernel,
        out_shape=jax.ShapeDtypeStruct((n_pad, hidden_size), out_dtype),
        grid=grid,
        in_specs=[
            pl.BlockSpec(memory_space=pltpu.MemorySpace.SMEM),          # stats (3,)
            pl.BlockSpec((tm, fdim), lambda i: (i, 0)),                 # fasttext emb
            pl.BlockSpec((tm, 1), lambda i: (i, 0)),                    # similarity scores
            pl.BlockSpec((fdim, hidden_size), lambda i: (0, 0)),        # W_voc (resident)
            pl.BlockSpec((8, hidden_size), lambda i: (0, 0)),           # fused param vectors
        ],
        out_specs=pl.BlockSpec((tm, hidden_size), lambda i: (i, 0)),
        compiler_params=pltpu.CompilerParams(
            dimension_semantics=("parallel",),
        ),
        cost_estimate=cost,
    )(stats, emb2d, sim2d, wv, pvec)

    if n_pad != n:
        out2d = out2d[:n]
    vce = out2d.reshape(bs, top_k, hidden_size)
    # forward returns (top_K_fasttext_embeddings, visual_concept_embedding)
    return fasttext_emb, vce


def init_params(key, fasttext_dim, hidden_size):
    """Deterministic synthetic parameters matching the module's __init__ shapes."""
    k1, k2, k3, k4 = jax.random.split(key, 4)
    bound_voc = 1.0 / jnp.sqrt(fasttext_dim)
    bound_score = 1.0  # in_features = 1
    return {
        "W_voc": jax.random.uniform(k1, (fasttext_dim, hidden_size), jnp.float32,
                                    -bound_voc, bound_voc),
        "b_voc": jax.random.uniform(k2, (1, hidden_size), jnp.float32,
                                    -bound_voc, bound_voc),
        "g_voc": jnp.ones((1, hidden_size), jnp.float32),
        "beta_voc": jnp.zeros((1, hidden_size), jnp.float32),
        "W_score": jax.random.uniform(k3, (1, hidden_size), jnp.float32,
                                      -bound_score, bound_score),
        "b_score": jax.random.uniform(k4, (1, hidden_size), jnp.float32,
                                      -bound_score, bound_score),
        "g_score": jnp.ones((1, hidden_size), jnp.float32),
        "beta_score": jnp.zeros((1, hidden_size), jnp.float32),
    }


def _layernorm(x, gamma, beta):
    mu = jnp.mean(x, axis=-1, keepdims=True)
    var = jnp.mean((x - mu) * (x - mu), axis=-1, keepdims=True)
    return (x - mu) * jax.lax.rsqrt(var + LN_EPS) * gamma + beta


def reference_forward(fasttext_emb, similarities, params):
    """Pure-JAX f32 reference mirroring the PyTorch forward semantics."""
    xv = fasttext_emb @ params["W_voc"] + params["b_voc"][0]
    ev = _layernorm(xv, params["g_voc"][0], params["beta_voc"][0])
    xs = similarities[..., None] * params["W_score"][0] + params["b_score"][0]
    es = _layernorm(xs, params["g_score"][0], params["beta_score"][0])
    return ev + es


if __name__ == "__main__":
    BS, TOP_K, HIDDEN = 2, 8, 32

    key = jax.random.PRNGKey(0)
    kp, ke, ks = jax.random.split(key, 3)
    params = init_params(kp, FASTTEXT_DIM, HIDDEN)

    fasttext_emb = jax.random.normal(ke, (BS, TOP_K, FASTTEXT_DIM), jnp.float32)
    # softmax-like similarity scores in (0,1)
    similarities = jax.nn.softmax(jax.random.normal(ks, (BS, TOP_K)), axis=-1)

    emb_out, vce = savo_forward(fasttext_emb, similarities, params, HIDDEN)
    jax.block_until_ready(vce)

    ref = reference_forward(fasttext_emb, similarities, params)
    assert vce.shape == (BS, TOP_K, HIDDEN)
    assert emb_out.shape == (BS, TOP_K, FASTTEXT_DIM)
    # bf16 casts of the matmul operands loosen the tolerance vs the f32 reference.
    assert jnp.allclose(vce, ref, atol=2e-2, rtol=2e-2), "mismatch vs reference"

    print("KERNEL_OK")
</pallas_src>

<mosaic_0001>
module attributes {stable_mosaic.version = 11 : i64} {
  func.func @savo_kernel(%arg0: i32, %arg1: memref<3xf32, #tpu.memory_space<smem>>, %arg2: memref<16x300xf32, #tpu.memory_space<vmem>>, %arg3: memref<16x1xf32, #tpu.memory_space<vmem>>, %arg4: memref<300x32xbf16, #tpu.memory_space<vmem>>, %arg5: memref<8x32xf32, #tpu.memory_space<vmem>>, %arg6: memref<16x32xf32, #tpu.memory_space<vmem>>) attributes {dimension_semantics = [#tpu.dimension_semantics<parallel>], iteration_bounds = array<i64: 1>, scalar_prefetch = 0 : i64, scratch_operands = 0 : i64, tpu.core_type = #tpu.core_type<tc>, window_params = [{transform_indices = @transform_0, window_bounds = array<i64: 3>}, {transform_indices = @transform_1, window_bounds = array<i64: 16, 300>}, {transform_indices = @transform_2, window_bounds = array<i64: 16, 1>}, {pipeline_mode = #tpu.pipeline_mode<synchronous>, transform_indices = @transform_3, window_bounds = array<i64: 300, 32>}, {pipeline_mode = #tpu.pipeline_mode<synchronous>, transform_indices = @transform_4, window_bounds = array<i64: 8, 32>}, {transform_indices = @transform_5, window_bounds = array<i64: 16, 32>}]} {
    %c0 = arith.constant 0 : index
    %c0_0 = arith.constant 0 : index
    %0 = vector.load %arg3[%c0, %c0_0] : memref<16x1xf32, #tpu.memory_space<vmem>>, vector<16x1xf32>
    %c0_1 = arith.constant 0 : index
    %c0_2 = arith.constant 0 : index
    %1 = vector.load %arg2[%c0_1, %c0_2] : memref<16x300xf32, #tpu.memory_space<vmem>>, vector<16x300xf32>
    %2 = arith.truncf %1 : vector<16x300xf32> to vector<16x300xbf16>
    %c0_3 = arith.constant 0 : index
    %c0_4 = arith.constant 0 : index
    %3 = vector.load %arg5[%c0_3, %c0_4] : memref<8x32xf32, #tpu.memory_space<vmem>>, vector<8x32xf32>
    %4 = vector.extract_strided_slice %3 {offsets = [0, 0], sizes = [1, 32], strides = [1, 1]} : vector<8x32xf32> to vector<1x32xf32>
    %5 = vector.extract_strided_slice %3 {offsets = [1, 0], sizes = [1, 32], strides = [1, 1]} : vector<8x32xf32> to vector<1x32xf32>
    %6 = vector.extract_strided_slice %3 {offsets = [2, 0], sizes = [1, 32], strides = [1, 1]} : vector<8x32xf32> to vector<1x32xf32>
    %7 = vector.extract_strided_slice %3 {offsets = [3, 0], sizes = [1, 32], strides = [1, 1]} : vector<8x32xf32> to vector<1x32xf32>
    %8 = vector.extract_strided_slice %3 {offsets = [4, 0], sizes = [1, 32], strides = [1, 1]} : vector<8x32xf32> to vector<1x32xf32>
    %c0_5 = arith.constant 0 : index
    %c0_6 = arith.constant 0 : index
    %9 = vector.load %arg4[%c0_5, %c0_6] : memref<300x32xbf16, #tpu.memory_space<vmem>>, vector<300x32xbf16>
    %cst = arith.constant dense<0.000000e+00> : vector<16x32xf32>
    %10 = tpu.matmul %2, %9, %cst {dimension_numbers = #tpu.dot_dimension_numbers<[1], [0], [0], [1], [0, 0, 1, 1], [], []>} : vector<16x300xbf16>, vector<300x32xbf16>, vector<16x32xf32> -> vector<16x32xf32>
    %11 = vector.broadcast %4 : vector<1x32xf32> to vector<16x32xf32>
    %12 = arith.addf %10, %11 : vector<16x32xf32>
    %cst_7 = arith.constant dense<0.000000e+00> : vector<16xf32>
    %13 = vector.multi_reduction <add>, %12, %cst_7 [1] : vector<16x32xf32> to vector<16xf32>
    %14 = vector.shape_cast %13 : vector<16xf32> to vector<16x1xf32>
    %cst_8 = arith.constant 3.200000e+01 : f32
    %15 = vector.broadcast %cst_8 : f32 to vector<16x1xf32>
    %16 = arith.divf %14, %15 : vector<16x1xf32>
    %17 = arith.mulf %12, %12 : vector<16x32xf32>
    %cst_9 = arith.constant dense<0.000000e+00> : vector<16xf32>
    %18 = vector.multi_reduction <add>, %17, %cst_9 [1] : vector<16x32xf32> to vector<16xf32>
    %19 = vector.shape_cast %18 : vector<16xf32> to vector<16x1xf32>
    %cst_10 = arith.constant 3.200000e+01 : f32
    %20 = vector.broadcast %cst_10 : f32 to vector<16x1xf32>
    %21 = arith.divf %19, %20 : vector<16x1xf32>
    %22 = arith.mulf %16, %16 : vector<16x1xf32>
    %23 = arith.subf %21, %22 : vector<16x1xf32>
    %24 = vector.broadcast %16 : vector<16x1xf32> to vector<16x32xf32>
    %25 = arith.subf %12, %24 : vector<16x32xf32>
    %cst_11 = arith.constant 9.99999974E-6 : f32
    %26 = vector.broadcast %cst_11 : f32 to vector<16x1xf32>
    %27 = arith.addf %23, %26 : vector<16x1xf32>
    %28 = math.rsqrt %27 : vector<16x1xf32>
    %29 = vector.broadcast %28 : vector<16x1xf32> to vector<16x32xf32>
    %30 = arith.mulf %25, %29 : vector<16x32xf32>
    %31 = vector.broadcast %5 : vector<1x32xf32> to vector<16x32xf32>
    %32 = arith.mulf %30, %31 : vector<16x32xf32>
    %c0_12 = arith.constant 0 : index
    %33 = memref.load %arg1[%c0_12] : memref<3xf32, #tpu.memory_space<smem>>
    %c1 = arith.constant 1 : index
    %34 = memref.load %arg1[%c1] : memref<3xf32, #tpu.memory_space<smem>>
    %c2 = arith.constant 2 : index
    %35 = memref.load %arg1[%c2] : memref<3xf32, #tpu.memory_space<smem>>
    %36 = arith.mulf %0, %0 : vector<16x1xf32>
    %37 = vector.broadcast %33 : f32 to vector<16x1xf32>
    %38 = arith.mulf %36, %37 : vector<16x1xf32>
    %cst_13 = arith.constant 2.000000e+00 : f32
    %39 = vector.broadcast %cst_13 : f32 to vector<16x1xf32>
    %40 = arith.mulf %39, %0 : vector<16x1xf32>
    %41 = vector.broadcast %34 : f32 to vector<16x1xf32>
    %42 = arith.mulf %40, %41 : vector<16x1xf32>
    %43 = arith.addf %38, %42 : vector<16x1xf32>
    %44 = vector.broadcast %35 : f32 to vector<16x1xf32>
    %45 = arith.addf %43, %44 : vector<16x1xf32>
    %cst_14 = arith.constant 9.99999974E-6 : f32
    %46 = vector.broadcast %cst_14 : f32 to vector<16x1xf32>
    %47 = arith.addf %45, %46 : vector<16x1xf32>
    %48 = math.rsqrt %47 : vector<16x1xf32>
    %49 = vector.broadcast %0 : vector<16x1xf32> to vector<16x32xf32>
    %50 = vector.broadcast %7 : vector<1x32xf32> to vector<16x32xf32>
    %51 = arith.mulf %49, %50 : vector<16x32xf32>
    %52 = vector.broadcast %8 : vector<1x32xf32> to vector<16x32xf32>
    %53 = arith.addf %51, %52 : vector<16x32xf32>
    %54 = vector.broadcast %48 : vector<16x1xf32> to vector<16x32xf32>
    %55 = arith.mulf %53, %54 : vector<16x32xf32>
    %56 = arith.addf %32, %55 : vector<16x32xf32>
    %57 = vector.broadcast %6 : vector<1x32xf32> to vector<16x32xf32>
    %58 = arith.addf %56, %57 : vector<16x32xf32>
    %c0_15 = arith.constant 0 : index
    %c0_16 = arith.constant 0 : index
    %59 = vector.load %arg6[%c0_15, %c0_16] : memref<16x32xf32, #tpu.memory_space<vmem>>, vector<16x32xf32>
    tpu.vector_store %arg6[%c0_15, %c0_16], %58 {strides = array<i32>} : memref<16x32xf32, #tpu.memory_space<vmem>>, vector<16x32xf32>,
    return
  }
  func.func @transform_0(%arg0: i32) -> i32 {
    %c0_i32 = arith.constant 0 : i32
    %c0_i32_0 = arith.constant 0 : i32
    return %c0_i32 : i32
  }
  func.func @transform_1(%arg0: i32) -> (i32, i32) {
    %c0_i32 = arith.constant 0 : i32
    %c0_i32_0 = arith.constant 0 : i32
    return %arg0, %c0_i32 : i32, i32
  }
  func.func @transform_2(%arg0: i32) -> (i32, i32) {
    %c0_i32 = arith.constant 0 : i32
    %c0_i32_0 = arith.constant 0 : i32
    return %arg0, %c0_i32 : i32, i32
  }
  func.func @transform_3(%arg0: i32) -> (i32, i32) {
    %c0_i32 = arith.constant 0 : i32
    %c0_i32_0 = arith.constant 0 : i32
    %c0_i32_1 = arith.constant 0 : i32
    return %c0_i32, %c0_i32_0 : i32, i32
  }
  func.func @transform_4(%arg0: i32) -> (i32, i32) {
    %c0_i32 = arith.constant 0 : i32
    %c0_i32_0 = arith.constant 0 : i32
    %c0_i32_1 = arith.constant 0 : i32
    return %c0_i32, %c0_i32_0 : i32, i32
  }
  func.func @transform_5(%arg0: i32) -> (i32, i32) {
    %c0_i32 = arith.constant 0 : i32
    %c0_i32_0 = arith.constant 0 : i32
    return %arg0, %c0_i32 : i32, i32
  }
}

</mosaic_0001>

<bundles_post_ra>
// kernel: savo_forward.1
= control target key start
LH: loop header
LB: loop body
LE: loop exit
PB: predicated region body
PF: predicated region fallthrough
CT: control target
= control target key end

     0   :  { %10 = vsyncpa [#allocation4], 0  ;;  %s705_s0 = inlined_call_operand.vmem [shape: f32[3], index: 0, kind: input, shape index: {}]   ;;  %s706_s1 = inlined_call_operand.vmem [shape: f32[16,300], index: 1, kind: input, shape index: {}]   ;;  %s707_s2 = inlined_call_operand.vmem [shape: f32[16,1], index: 2, kind: input, shape index: {}]   ;;  %s708_s3 = inlined_call_operand.vmem [shape: bf16[300,32], index: 3, kind: input, shape index: {}]   ;;  %s709_s4 = inlined_call_operand.vmem [shape: f32[8,32], index: 4, kind: input, shape index: {}]   ;;  %s710_s5 = inlined_call_operand.hbm [shape: f32[16,32], index: 5, kind: output, shape index: {}]  }
   0x1   :  { %11 = vsyncpa [#allocation3], 0  ;;  %s18_s20 = sshll.u32 %s705_s0, 4  ;;  %s19_s20 = int_to_ptr.vmem [resolvable:$true] %s18_s20 }
   0x2   :  { %s507_s21 = scalar_lea.vmem %s19_s20, 16  ;;  %p512_p1 = scmp.lt.s32.totalorder %s19_s20, %s19_s20 }
   0x3   :  { %p508_p0 = scmp.ne.s32.totalorder %s19_s20, %s507_s21  ;;  %p513_p2 = scmp.lt.s32.totalorder %s507_s21, %s507_s21 }
   0x5   :  { %p514_p3 = por %p513_p2, %p512_p1 }
   0x7   :  { %p515_p4 = pnand %p514_p3, %p508_p0 }
   0x9   :  { %518 = shalt.err (!%p515_p4)
}
   0xa   :  { %s543_s22 = smov [#allocation2]  }
   0xb   :  { %21 = dma.vmem_to_smem %s19_s20, 16, %s543_s22, [#allocation4]  }
   0xc   :  { %539 = dma.done.wait [#allocation4], 16  }
   0xd   :  { %540 = vsyncadd [#allocation4], 4294967280 }
   0xe   :  { %33 = sfence }
   0xf   :  { %v480_v0 = vld [vmem:[%s708_s3 + $0x78] sm:$0xff]   ;;  %v544_v2 = vmov 0.0   ;;  %v482_v3 = vld [vmem:[%s708_s3 + $0x70] sm:$0xff]   ;;  %vm545_vm0 = vmmov 0   ;;  %v484_v5 = vld [vmem:[%s708_s3 + $0x68] sm:$0xff]   ;;  %vm206_vm1 = vcmask 1045504   ;;  %v85_v31 = vlaneseq }
  0x10   :  { %v481_v1 = vld [vmem:[%s708_s3 + $0x38] sm:$0xff]   ;;  %461 = vmatprep.subr.bf16.mxu1 %v544_v2  ;;  %435 = vmatprep.subr.bf16.mxu0 %v480_v0  ;;  %v483_v4 = vld [vmem:[%s708_s3 + $0x30] sm:$0xff]   ;;  %v485_v6 = vld [vmem:[%s708_s3 + $0x28] sm:$0xff]   ;;  %vm202_vm2 = vcmask 359424   ;;  %v546_v30 = vmov 0   ;;  %s658_s21 = sld [smem:[#allocation2]] }
  0x11   :  { %436 = vmatpush3.bf16.msra.mxu0 %v481_v1  ;;  %467 = vmatprep.mubr.msk.bf16.mxu1 %vm545_vm0, %v544_v2  ;;  %v486_v7 = vld [vmem:[%s708_s3 + $0x60] sm:$0xff]   ;;  %v488_v9 = vld [vmem:[%s708_s3 + $0x58] sm:$0xff]   ;;  %v492_v10 = vld [vmem:[%s708_s3 + $0x90] sm:$0x3f]   ;;  %v662_v33 = vshrl.u32 %v85_v31, 7  ;;  %s673_s25 = sld [smem:[#allocation2 + $0x2]] }
  0x12   :  { %437 = vmatprep.subr.bf16.mxu0 %v482_v3  ;;  %v487_v8 = vld [vmem:[%s708_s3 + $0x20] sm:$0xff]   ;;  %v489_v11 = vld [vmem:[%s708_s3 + $0x18] sm:$0xff]   ;;  %v208_v12 = vsel %vm206_vm1, %v492_v10, 0  ;;  %v495_v13 = vld [vmem:[%s708_s3 + $0x88] sm:$0xff]   ;;  %479 = vset.pattern.permute.xlu1 %v546_v30  ;;  %vm292_vm3 = vcmask 261120  }
  0x13   :  { %462 = vmatpush3.bf16.msra.mxu1 %v208_v12  ;;  %v490_v14 = vld [vmem:[%s708_s3 + $0x50] sm:$0xff]   ;;  %v498_v16 = vld [vmem:[%s708_s3 + $0x80] sm:$0xff]   ;;  %v38_v17 = vld [vmem:[%s706_s1 + $0x8] sm:$0xff]  ;;  %478 = vset.pattern.permute.xlu0 %v546_v30  ;;  %v87_v37 = vsub.s32 0, %v662_v33 }
  0x14   :  { %463 = vmatprep.subr.bf16.mxu1 %v544_v2  ;;  %v491_v15 = vld [vmem:[%s708_s3 + $0x10] sm:$0xff]   ;;  %v41_v18 = vld [vmem:[%s706_s1 + $0x20] sm:$0xff]  ;;  %v493_v19 = vld [vmem:[%s708_s3 + $0x48] sm:$0xff]  }
  0x15   :  { %438 = vmatpush3.bf16.msra.mxu0 %v483_v4  ;;  %v44_v20 = vpack.c.bf16 %v41_v18, %v38_v17  ;;  %v39_v21 = vld [vmem:[%s706_s1 + $0x10] sm:$0xff]  ;;  %v42_v22 = vld [vmem:[%s706_s1 + $0x28] sm:$0xff]  ;;  %v496_v25 = vld [vmem:[%s708_s3 + $0x40] sm:$0xff]  }
  0x16   :  { %439 = vmatprep.subr.bf16.mxu0 %v484_v5  ;;  %v45_v23 = vpack.c.bf16 %v42_v22, %v39_v21  ;;  %v494_v24 = vld [vmem:[%s708_s3 + $0x8] sm:$0xff]   ;;  %v497_v26 = vld [vmem:[%s708_s3] sm:$0xff]   ;;  %v40_v28 = vld [vmem:[%s706_s1 + $0x18] sm:$0xff]  ;;  %s660_s3 = sld [smem:[#allocation2 + $0x1]]  ;;  %v335_v42 = vstv %s658_s21  ;;  %v364_v21 = vsub.s32 3, %v662_v33 }
  0x17   :  { %464 = vmatpush3.bf16.msra.mxu1 %v495_v13  ;;  %242 = vmatprep.mubr.bf16.mxu0 %v44_v20  ;;  %v37_v27 = vld [vmem:[%s706_s1] sm:$0xff]  ;;  %v345_v54 = vstv %s673_s25  ;;  %v36_v1 = vld [vmem:[%s707_s2 + $0x8] sm:$0xff] }
  0x18   :  { %465 = vmatprep.subr.bf16.mxu1 %v544_v2  ;;  %v43_v29 = vpack.c.bf16 %v40_v28, %v37_v27  ;;  %v35_v35 = vld [vmem:[%s707_s2] sm:$0xff]  ;;  %v334_v3 = vmul.f32 %v36_v1, %v36_v1  ;;  %v339_v4 = vmul.f32 2.0, %v36_v1  ;;  %s547_s2 = smov [#allocation5]  }
  0x19   :  { %440 = vmatpush3.bf16.msra.mxu0 %v485_v6  ;;  %v333_v38 = vmul.f32 %v35_v35, %v35_v35  ;;  %v338_v39 = vmul.f32 2.0, %v35_v35  ;;  %v671_v40 = vld [vmem:[%s709_s4] sm:$0xff]  ;;  %s401_s0 = sshll.u32 %s547_s2, 4  ;;  %s402_s0 = int_to_ptr.vmem [resolvable:$true] %s401_s0 }
  0x1a   :  { %441 = vmatprep.subr.bf16.mxu0 %v486_v7  ;;  %v88_v45 = vrot.slane %v671_v40, %v87_v37  ;;  %v337_v5 = vmul.f32 %v335_v42, %v334_v3  ;;  %s519_s27 = scalar_lea.vmem %s402_s0, 256  ;;  %p524_p6 = scmp.lt.s32.totalorder %s402_s0, %s402_s0 }
  0x1b   :  { %466 = vmatpush3.bf16.msra.mxu1 %v498_v16  ;;  %v336_v46 = vmul.f32 %v335_v42, %v333_v38  ;;  %p520_p5 = scmp.ne.s32.totalorder %s402_s0, %s519_s27  ;;  %p525_p7 = scmp.lt.s32.totalorder %s519_s27, %s519_s27 }
  0x1c   :  { %v340_v43 = vstv %s660_s3 }
  0x1d   :  { %442 = vmatpush3.bf16.msra.mxu0 %v487_v8  ;;  %v341_v47 = vmul.f32 %v340_v43, %v338_v39  ;;  %v342_v6 = vmul.f32 %v340_v43, %v339_v4  ;;  %p526_p8 = por %p525_p7, %p524_p6 }
  0x1e   :  { %443 = vmatprep.subr.bf16.mxu0 %v488_v9  ;;  %468 = vmatmul.mubr.msk.bf16.vlgmr.msra.gmra.mxu1 %vm202_vm2, %v45_v23  ;;  %v365_v23 = vrot.slane %v671_v40, %v364_v21 }
  0x1f   :  { %v343_v52 = vadd.f32 %v341_v47, %v336_v46  ;;  %v344_v7 = vadd.f32 %v342_v6, %v337_v5  ;;  %p527_p9 = pnand %p526_p8, %p520_p5 }
  0x21   :  { %444 = vmatpush3.bf16.msra.mxu0 %v489_v11  ;;  %v346_v60 = vadd.f32 %v345_v54, %v343_v52  ;;  %v347_v8 = vadd.f32 %v345_v54, %v344_v7 }
  0x22   :  { %445 = vmatprep.subr.bf16.mxu0 %v490_v14 }
  0x23   :  { %v348_v0 = vadd.f32 1e-05, %v346_v60  ;;  %v349_v10 = vadd.f32 1e-05, %v347_v8 }
  0x25   :  { %446 = vmatpush3.bf16.msra.mxu0 %v491_v15  ;;  %499 = vrsqrt.f32 %v348_v0 }
  0x26   :  { %447 = vmatprep.subr.bf16.mxu0 %v493_v19  ;;  %501 = vrsqrt.f32 %v349_v10 }
  0x29   :  { %448 = vmatpush3.bf16.msra.mxu0 %v494_v24  ;;  %v370_v24 = vsub.s32 4, %v662_v33 }
  0x2a   :  { %449 = vmatprep.subr.bf16.mxu0 %v496_v25  ;;  %v326_v25 = vsub.s32 1, %v662_v33 }
  0x2b   :  { %v371_v28 = vrot.slane %v671_v40, %v370_v24 }
  0x2c   :  { %v327_v30 = vrot.slane %v671_v40, %v326_v25 }
  0x2d   :  { %450 = vmatpush3.bf16.msra.mxu0 %v497_v26 }
  0x30   :  { %243 = vmatmul.mubr.bf16.vlgmr.msra.gmra.mxu0 %v43_v29 }
  0x32   :  { %v500_v2 = vpop.eup %499 }
  0x33   :  { %v502_v12 = vpop.eup %501 }
  0xde   :  { %v285_v32 = vpop.f32.mrf.mxu1 }
  0xe0   :  { %v469_v34 = vpop.f32.mrf.mxu1 }
  0xe2   :  { %v288_v36 = vpop.f32.mrf.mxu1 }
  0xe4   :  { %v470_v41 = vpop.f32.mrf.mxu1 }
  0xf0   :  { %v451_v44 = vpop.f32.mrf.mxu0 }
  0xf2   :  { %v452_v48 = vpop.f32.mrf.mxu0 }
  0xf3   :  { %v453_v49 = vadd.f32 %v452_v48, %v451_v44 }
  0xf4   :  { %v454_v50 = vpop.f32.mrf.mxu0 }
  0xf5   :  { %v245_v51 = vadd.f32 %v453_v49, %v88_v45 }
  0xf6   :  { %v455_v53 = vpop.f32.mrf.mxu0 }
  0xf7   :  { %v456_v55 = vadd.f32 %v455_v53, %v454_v50  ;;  %v286_v56 = vadd.f32 %v285_v32, %v245_v51  ;;  %v390_v32 = vsub.s32 2, %v662_v33 }
  0xf9   :  { %v248_v57 = vadd.f32 %v456_v55, %v88_v45  ;;  %v293_v58 = vsel %vm292_vm3, %v286_v56, 0.0  ;;  %v302_v59 = vmul.f32 %v286_v56, %v286_v56  ;;  %v391_v39 = vrot.slane %v671_v40, %v390_v32 }
  0xfa   :  { %294 = vadd.xlane.f32.xlu0 %v293_v58 }
  0xfb   :  { %v680_v61 = vadd.f32 %v288_v36, %v248_v57  ;;  %v304_v62 = vsel %vm292_vm3, %v302_v59, 0.0 }
  0xfc   :  { %305 = vadd.xlane.f32.xlu1 %v304_v62 }
  0xfd   :  { %v296_v63 = vsel %vm292_vm3, %v680_v61, 0.0  ;;  %v303_v9 = vmul.f32 %v680_v61, %v680_v61 }
  0xfe   :  { %297 = vadd.xlane.f32.xlu0 %v296_v63 }
  0xff   :  { %v307_v11 = vsel %vm292_vm3, %v303_v9, 0.0 }
 0x10d   :  { %359 = vperm.xlu1 %479, %v36_v1  }
 0x111   :  { %376 = vperm.xlu1 %479, %v500_v2  }
 0x114   :  { %354 = vperm.xlu0 %478, %v35_v35  }
 0x135   :  { %308 = vadd.xlane.f32.xlu1 %v307_v11 }
 0x146   :  { %381 = vperm.xlu1 %479, %v502_v12  }
 0x183   :  { %v295_v13 = vpop.xlane.xlu0 %294 }
 0x184   :  { %v300_v14 = vmul.f32 0.03125, %v295_v13 }
 0x185   :  { %v306_v15 = vpop.xlane.xlu1 %305 }
 0x186   :  { %v312_v16 = vmul.f32 %v300_v14, %v300_v14  ;;  %v310_v17 = vmul.f32 0.03125, %v306_v15  ;;  %v316_v29 = vsub.f32 %v286_v56, %v300_v14 }
 0x187   :  { %v298_v20 = vpop.xlane.xlu0 %297 }
 0x188   :  { %v314_v18 = vsub.f32 %v310_v17, %v312_v16  ;;  %v301_v43 = vmul.f32 0.03125, %v298_v20 }
 0x189   :  { %v360_v27 = vpop.permute.xlu1 %359 }
 0x18a   :  { %v318_v19 = vadd.f32 1e-05, %v314_v18  ;;  %v313_v45 = vmul.f32 %v301_v43, %v301_v43  ;;  %v367_v49 = vmul.f32 %v365_v23, %v360_v27  ;;  %v317_v33 = vsub.f32 %v680_v61, %v301_v43 }
 0x18c   :  { %503 = vrsqrt.f32 %v318_v19  ;;  %v373_v53 = vadd.f32 %v371_v28, %v367_v49 }
 0x18d   :  { %v377_v36 = vpop.permute.xlu1 %376 }
 0x18f   :  { %v355_v22 = vpop.permute.xlu0 %354 }
 0x190   :  { %v366_v26 = vmul.f32 %v365_v23, %v355_v22 }
 0x192   :  { %v372_v31 = vadd.f32 %v371_v28, %v366_v26 }
 0x194   :  { %v384_v38 = vmul.f32 %v377_v36, %v372_v31 }
 0x199   :  { %v504_v34 = vpop.eup %503 }
 0x19a   :  { %v322_v35 = vmul.f32 %v504_v34, %v316_v29 }
 0x19c   :  { %v328_v37 = vmul.f32 %v327_v30, %v322_v35 }
 0x19e   :  { %v386_v41 = vadd.f32 %v384_v38, %v328_v37 }
 0x1a0   :  { %v392_v42 = vadd.f32 %v391_v39, %v386_v41 }
 0x1a2   :  { %394 = vst.msk [vmem:[#allocation5] sm:$0xff] %vm292_vm3, %v392_v42 }
 0x1be   :  { %v309_v44 = vpop.xlane.xlu1 %308 }
 0x1bf   :  { %v311_v46 = vmul.f32 0.03125, %v309_v44 }
 0x1c1   :  { %v315_v47 = vsub.f32 %v311_v46, %v313_v45 }
 0x1c2   :  { %v382_v51 = vpop.permute.xlu1 %381 }
 0x1c3   :  { %v319_v48 = vadd.f32 1e-05, %v315_v47  ;;  %v385_v40 = vmul.f32 %v382_v51, %v373_v53 }
 0x1c5   :  { %505 = vrsqrt.f32 %v319_v48 }
 0x1d2   :  { %v506_v50 = vpop.eup %505 }
 0x1d3   :  { %v323_v52 = vmul.f32 %v506_v50, %v317_v33 }
 0x1d5   :  { %v329_v54 = vmul.f32 %v327_v30, %v323_v52 }
 0x1d7   :  { %v387_v55 = vadd.f32 %v385_v40, %v329_v54 }
 0x1d9   :  { %v393_v56 = vadd.f32 %v391_v39, %v387_v55 }
 0x1db   :  { %395 = vst.msk [vmem:[#allocation5 + $0x8] sm:$0xff] %vm292_vm3, %v393_v56 }
 0x1dc   :  { %530 = shalt.err (!%p527_p9)
}
 0x1dd   :  { %s548_s28 = smov 128   ;;  %s549_s29 = smov 8  }
 0x1de   :  { %407 = dma.vmem_to_hbm [thread:$0]  %s402_s0, 256, %s710_s5, [#allocation3], %s548_s28, %s548_s28, %s549_s29  }
 0x1df   :  { %541 = dma.done.wait [#allocation3], 256  }
 0x1e0   :  { %542 = vsyncadd [#allocation3], 4294967040 }
 0x1e1   :  { %411 = vsyncpa [#allocation3], 1 }
 0x1e2   :  { %412 = vsyncpa [#allocation4], 1 }

</bundles_post_ra>
